<compile_context>
chip_gen: v5e
topology: v5e:2x2
jax: 0.10.0
libtpu: 0.0.40
codegen_flags: <defaults>
</compile_context>

<pallas_src>
import jax
import jax.numpy as jnp
import numpy as np
from jax import lax
from jax.experimental import pallas as pl
from jax.experimental.pallas import tpu as pltpu


def _forward_euler_kernel(T, B, n_x):
    def kernel(x0_ref, uproj_ref, w1x_ref, w2dt_ref, b2dt_ref, out_ref):
        # Hoist weight/bias loads (and the b2 broadcast) out of the recurrence;
        # JAX does not CSE broadcast_in_dim, so doing it per-iteration costs T broadcasts.
        w1x = w1x_ref[...]                                  # [n_x, H]
        w2dt = w2dt_ref[...]                                # [H, n_x]   (dt pre-folded)
        b2dt = jnp.broadcast_to(b2dt_ref[...], (B, n_x))    # [B, n_x]   (dt pre-folded)

        def step(t, x):
            # h = tanh(x @ W1x + (u[t] @ W1u + b1))  -- the u-projection is precomputed.
            h = jnp.tanh(
                jnp.dot(x, w1x, preferred_element_type=jnp.float32) + uproj_ref[t]
            )
            # dt already folded into W2 / b2, so the Euler update is just x + dx.
            x_new = x + jnp.dot(h, w2dt, preferred_element_type=jnp.float32) + b2dt
            out_ref[t] = x_new          # VMEM store; single HBM writeback at kernel end
            return x_new

        # Unrolled sequential recurrence; x_t carried in vregs across iterations.
        lax.fori_loop(0, T, step, x0_ref[...], unroll=True)

    return kernel


def forward_euler(x0, u, params, dt=1.0, ahead_step=0):
    """Pallas implementation of ForwardEuler.forward for ahead_step in {0, 1}."""
    # TODO(synk): ahead_step > 1 branch (the inner look-ahead rollout) not implemented.
    assert ahead_step in (0, 1), "only the main branch (ahead_step in {0,1}) is implemented"
    w1x, w1u, b1, w2, b2 = params
    T, B, n_u = u.shape
    _, n_x = x0.shape
    H = w1x.shape[1]

    dt = jnp.float32(dt)
    # Fold dt into the output-layer parameters once (one-time transform, not a per-call
    # input rescale) -> saves one VPU multiply per time step and keeps dt out of the
    # kernel closure (no recompile per dt value).
    w2dt = w2 * dt
    b2dt = b2 * dt

    # Hoist the input projection out of the recurrence: one [T*B, n_u] x [n_u, H] matmul
    # with decent MXU fill instead of T tiny matmuls inside the sequential loop.
    u_proj = (u.reshape(T * B, n_u) @ w1u + b1).reshape(T, B, H)

    kernel = _forward_euler_kernel(T, B, n_x)

    # The whole (small) problem lives in VMEM for the single grid step.
    # TODO(synk): for long sequences / large B,H (esp. v7x's 64 MiB VMEM), chunk the time
    # axis via the grid (carrying x in a VMEM scratch across chunks) instead of keeping
    # the full u_proj/xhat resident; and add a 'parallel' batch grid axis for megacore.
    return pl.pallas_call(
        kernel,
        out_shape=jax.ShapeDtypeStruct((T, B, n_x), jnp.float32),
        grid_spec=pltpu.PrefetchScalarGridSpec(
            num_scalar_prefetch=0,
            grid=(1,),
            in_specs=[
                pl.BlockSpec((B, n_x), lambda i: (0, 0)),        # x0
                pl.BlockSpec((T, B, H), lambda i: (0, 0, 0)),    # u_proj (u @ W1u + b1)
                pl.BlockSpec((n_x, H), lambda i: (0, 0)),        # W1x
                pl.BlockSpec((H, n_x), lambda i: (0, 0)),        # W2 * dt
                pl.BlockSpec((1, n_x), lambda i: (0, 0)),        # b2 * dt
            ],
            out_specs=pl.BlockSpec((T, B, n_x), lambda i: (0, 0, 0)),
        ),
        compiler_params=pltpu.CompilerParams(
            dimension_semantics=("arbitrary",),   # single sequential invocation
        ),
    )(x0, u_proj, w1x, w2dt, b2dt)


def forward_euler_ref(x0, u, params, dt=1.0):
    """Pure-JAX reference matching the PyTorch loop."""
    w1x, w1u, b1, w2, b2 = params
    x_step = x0
    outs = []
    for t in range(u.shape[0]):
        u_step = u[t]
        h = jnp.tanh(x_step @ w1x + u_step @ w1u + b1)
        dx = h @ w2 + b2
        x_step = x_step + dx * dt
        outs.append(x_step)
    return jnp.stack(outs, 0)


if __name__ == "__main__":
    # Small shapes: batch=8, state dim=4, input dim=3, hidden=32, seq=8.
    T, B, n_x, n_u, H = 8, 8, 4, 3, 32
    dt = 0.1

    key = jax.random.PRNGKey(0)
    k = jax.random.split(key, 7)
    x0 = jax.random.normal(k[0], (B, n_x), dtype=jnp.float32)
    u = jax.random.normal(k[1], (T, B, n_u), dtype=jnp.float32)

    # Deterministic parameter init for the wrapped state-space MLP model.
    w1x = 0.3 * jax.random.normal(k[2], (n_x, H), dtype=jnp.float32)
    w1u = 0.3 * jax.random.normal(k[3], (n_u, H), dtype=jnp.float32)
    b1 = 0.1 * jax.random.normal(k[4], (1, H), dtype=jnp.float32)
    w2 = 0.3 * jax.random.normal(k[5], (H, n_x), dtype=jnp.float32)
    b2 = 0.1 * jax.random.normal(k[6], (1, n_x), dtype=jnp.float32)
    params = (w1x, w1u, b1, w2, b2)

    xhat = forward_euler(x0, u, params, dt=dt, ahead_step=0)
    xhat = jax.block_until_ready(xhat)

    xhat_ref = forward_euler_ref(x0, u, params, dt=dt)
    np.testing.assert_allclose(np.asarray(xhat), np.asarray(xhat_ref),
                               rtol=1e-5, atol=1e-5)

    print("KERNEL_OK")
</pallas_src>

<mosaic_0001>
module attributes {stable_mosaic.version = 11 : i64} {
  func.func @kernel(%arg0: i32, %arg1: memref<8x4xf32, #tpu.memory_space<vmem>>, %arg2: memref<8x8x32xf32, #tpu.memory_space<vmem>>, %arg3: memref<4x32xf32, #tpu.memory_space<vmem>>, %arg4: memref<32x4xf32, #tpu.memory_space<vmem>>, %arg5: memref<1x4xf32, #tpu.memory_space<vmem>>, %arg6: memref<8x8x4xf32, #tpu.memory_space<vmem>>) attributes {dimension_semantics = [#tpu.dimension_semantics<arbitrary>], iteration_bounds = array<i64: 1>, scalar_prefetch = 0 : i64, scratch_operands = 0 : i64, tpu.core_type = #tpu.core_type<tc>, window_params = [{pipeline_mode = #tpu.pipeline_mode<synchronous>, transform_indices = @transform_0, window_bounds = array<i64: 8, 4>}, {pipeline_mode = #tpu.pipeline_mode<synchronous>, transform_indices = @transform_1, window_bounds = array<i64: 8, 8, 32>}, {pipeline_mode = #tpu.pipeline_mode<synchronous>, transform_indices = @transform_2, window_bounds = array<i64: 4, 32>}, {pipeline_mode = #tpu.pipeline_mode<synchronous>, transform_indices = @transform_3, window_bounds = array<i64: 32, 4>}, {pipeline_mode = #tpu.pipeline_mode<synchronous>, transform_indices = @transform_4, window_bounds = array<i64: 1, 4>}, {pipeline_mode = #tpu.pipeline_mode<synchronous>, transform_indices = @transform_5, window_bounds = array<i64: 8, 8, 4>}]} {
    %c0 = arith.constant 0 : index
    %c0_0 = arith.constant 0 : index
    %0 = vector.load %arg3[%c0, %c0_0] : memref<4x32xf32, #tpu.memory_space<vmem>>, vector<4x32xf32>
    %c0_1 = arith.constant 0 : index
    %c0_2 = arith.constant 0 : index
    %1 = vector.load %arg4[%c0_1, %c0_2] : memref<32x4xf32, #tpu.memory_space<vmem>>, vector<32x4xf32>
    %c0_3 = arith.constant 0 : index
    %c0_4 = arith.constant 0 : index
    %2 = vector.load %arg5[%c0_3, %c0_4] : memref<1x4xf32, #tpu.memory_space<vmem>>, vector<1x4xf32>
    %3 = vector.shape_cast %2 : vector<1x4xf32> to vector<1x4xf32>
    %4 = vector.broadcast %3 : vector<1x4xf32> to vector<8x4xf32>
    %c0_5 = arith.constant 0 : index
    %c0_6 = arith.constant 0 : index
    %5 = vector.load %arg1[%c0_5, %c0_6] : memref<8x4xf32, #tpu.memory_space<vmem>>, vector<8x4xf32>
    %c0_i32 = arith.constant 0 : i32
    %cst = arith.constant dense<0.000000e+00> : vector<8x32xf32>
    %6 = tpu.matmul %5, %0, %cst {dimension_numbers = #tpu.dot_dimension_numbers<[1], [0], [0], [1], [0, 0, 1, 1], [], []>} : vector<8x4xf32>, vector<4x32xf32>, vector<8x32xf32> -> vector<8x32xf32>
    %7 = arith.index_cast %c0_i32 : i32 to index
    %c0_7 = arith.constant 0 : index
    %c0_8 = arith.constant 0 : index
    %8 = vector.load %arg2[%7, %c0_7, %c0_8] : memref<8x8x32xf32, #tpu.memory_space<vmem>>, vector<1x8x32xf32>
    %9 = vector.shape_cast %8 : vector<1x8x32xf32> to vector<8x32xf32>
    %10 = arith.addf %6, %9 : vector<8x32xf32>
    %11 = math.tanh %10 : vector<8x32xf32>
    %cst_9 = arith.constant dense<0.000000e+00> : vector<8x4xf32>
    %12 = tpu.matmul %11, %1, %cst_9 {dimension_numbers = #tpu.dot_dimension_numbers<[1], [0], [0], [1], [0, 0, 1, 1], [], []>} : vector<8x32xf32>, vector<32x4xf32>, vector<8x4xf32> -> vector<8x4xf32>
    %13 = arith.addf %5, %12 : vector<8x4xf32>
    %14 = arith.addf %13, %4 : vector<8x4xf32>
    %15 = arith.index_cast %c0_i32 : i32 to index
    %c0_10 = arith.constant 0 : index
    %c0_11 = arith.constant 0 : index
    %16 = vector.load %arg6[%15, %c0_10, %c0_11] : memref<8x8x4xf32, #tpu.memory_space<vmem>>, vector<1x8x4xf32>
    %17 = vector.shape_cast %16 : vector<1x8x4xf32> to vector<8x4xf32>
    %18 = vector.shape_cast %14 : vector<8x4xf32> to vector<1x8x4xf32>
    tpu.vector_store %arg6[%15, %c0_10, %c0_11], %18 {strides = array<i32>} : memref<8x8x4xf32, #tpu.memory_space<vmem>>, vector<1x8x4xf32>,
    %c1_i32 = arith.constant 1 : i32
    %cst_12 = arith.constant dense<0.000000e+00> : vector<8x32xf32>
    %19 = tpu.matmul %14, %0, %cst_12 {dimension_numbers = #tpu.dot_dimension_numbers<[1], [0], [0], [1], [0, 0, 1, 1], [], []>} : vector<8x4xf32>, vector<4x32xf32>, vector<8x32xf32> -> vector<8x32xf32>
    %20 = arith.index_cast %c1_i32 : i32 to index
    %c0_13 = arith.constant 0 : index
    %c0_14 = arith.constant 0 : index
    %21 = vector.load %arg2[%20, %c0_13, %c0_14] : memref<8x8x32xf32, #tpu.memory_space<vmem>>, vector<1x8x32xf32>
    %22 = vector.shape_cast %21 : vector<1x8x32xf32> to vector<8x32xf32>
    %23 = arith.addf %19, %22 : vector<8x32xf32>
    %24 = math.tanh %23 : vector<8x32xf32>
    %cst_15 = arith.constant dense<0.000000e+00> : vector<8x4xf32>
    %25 = tpu.matmul %24, %1, %cst_15 {dimension_numbers = #tpu.dot_dimension_numbers<[1], [0], [0], [1], [0, 0, 1, 1], [], []>} : vector<8x32xf32>, vector<32x4xf32>, vector<8x4xf32> -> vector<8x4xf32>
    %26 = arith.addf %14, %25 : vector<8x4xf32>
    %27 = arith.addf %26, %4 : vector<8x4xf32>
    %28 = arith.index_cast %c1_i32 : i32 to index
    %c0_16 = arith.constant 0 : index
    %c0_17 = arith.constant 0 : index
    %29 = vector.load %arg6[%28, %c0_16, %c0_17] : memref<8x8x4xf32, #tpu.memory_space<vmem>>, vector<1x8x4xf32>
    %30 = vector.shape_cast %29 : vector<1x8x4xf32> to vector<8x4xf32>
    %31 = vector.shape_cast %27 : vector<8x4xf32> to vector<1x8x4xf32>
    tpu.vector_store %arg6[%28, %c0_16, %c0_17], %31 {strides = array<i32>} : memref<8x8x4xf32, #tpu.memory_space<vmem>>, vector<1x8x4xf32>,
    %c2_i32 = arith.constant 2 : i32
    %cst_18 = arith.constant dense<0.000000e+00> : vector<8x32xf32>
    %32 = tpu.matmul %27, %0, %cst_18 {dimension_numbers = #tpu.dot_dimension_numbers<[1], [0], [0], [1], [0, 0, 1, 1], [], []>} : vector<8x4xf32>, vector<4x32xf32>, vector<8x32xf32> -> vector<8x32xf32>
    %33 = arith.index_cast %c2_i32 : i32 to index
    %c0_19 = arith.constant 0 : index
    %c0_20 = arith.constant 0 : index
    %34 = vector.load %arg2[%33, %c0_19, %c0_20] : memref<8x8x32xf32, #tpu.memory_space<vmem>>, vector<1x8x32xf32>
    %35 = vector.shape_cast %34 : vector<1x8x32xf32> to vector<8x32xf32>
    %36 = arith.addf %32, %35 : vector<8x32xf32>
    %37 = math.tanh %36 : vector<8x32xf32>
    %cst_21 = arith.constant dense<0.000000e+00> : vector<8x4xf32>
    %38 = tpu.matmul %37, %1, %cst_21 {dimension_numbers = #tpu.dot_dimension_numbers<[1], [0], [0], [1], [0, 0, 1, 1], [], []>} : vector<8x32xf32>, vector<32x4xf32>, vector<8x4xf32> -> vector<8x4xf32>
    %39 = arith.addf %27, %38 : vector<8x4xf32>
    %40 = arith.addf %39, %4 : vector<8x4xf32>
    %41 = arith.index_cast %c2_i32 : i32 to index
    %c0_22 = arith.constant 0 : index
    %c0_23 = arith.constant 0 : index
    %42 = vector.load %arg6[%41, %c0_22, %c0_23] : memref<8x8x4xf32, #tpu.memory_space<vmem>>, vector<1x8x4xf32>
    %43 = vector.shape_cast %42 : vector<1x8x4xf32> to vector<8x4xf32>
    %44 = vector.shape_cast %40 : vector<8x4xf32> to vector<1x8x4xf32>
    tpu.vector_store %arg6[%41, %c0_22, %c0_23], %44 {strides = array<i32>} : memref<8x8x4xf32, #tpu.memory_space<vmem>>, vector<1x8x4xf32>,
    %c3_i32 = arith.constant 3 : i32
    %cst_24 = arith.constant dense<0.000000e+00> : vector<8x32xf32>
    %45 = tpu.matmul %40, %0, %cst_24 {dimension_numbers = #tpu.dot_dimension_numbers<[1], [0], [0], [1], [0, 0, 1, 1], [], []>} : vector<8x4xf32>, vector<4x32xf32>, vector<8x32xf32> -> vector<8x32xf32>
    %46 = arith.index_cast %c3_i32 : i32 to index
    %c0_25 = arith.constant 0 : index
    %c0_26 = arith.constant 0 : index
    %47 = vector.load %arg2[%46, %c0_25, %c0_26] : memref<8x8x32xf32, #tpu.memory_space<vmem>>, vector<1x8x32xf32>
    %48 = vector.shape_cast %47 : vector<1x8x32xf32> to vector<8x32xf32>
    %49 = arith.addf %45, %48 : vector<8x32xf32>
    %50 = math.tanh %49 : vector<8x32xf32>
    %cst_27 = arith.constant dense<0.000000e+00> : vector<8x4xf32>
    %51 = tpu.matmul %50, %1, %cst_27 {dimension_numbers = #tpu.dot_dimension_numbers<[1], [0], [0], [1], [0, 0, 1, 1], [], []>} : vector<8x32xf32>, vector<32x4xf32>, vector<8x4xf32> -> vector<8x4xf32>
    %52 = arith.addf %40, %51 : vector<8x4xf32>
    %53 = arith.addf %52, %4 : vector<8x4xf32>
    %54 = arith.index_cast %c3_i32 : i32 to index
    %c0_28 = arith.constant 0 : index
    %c0_29 = arith.constant 0 : index
    %55 = vector.load %arg6[%54, %c0_28, %c0_29] : memref<8x8x4xf32, #tpu.memory_space<vmem>>, vector<1x8x4xf32>
    %56 = vector.shape_cast %55 : vector<1x8x4xf32> to vector<8x4xf32>
    %57 = vector.shape_cast %53 : vector<8x4xf32> to vector<1x8x4xf32>
    tpu.vector_store %arg6[%54, %c0_28, %c0_29], %57 {strides = array<i32>} : memref<8x8x4xf32, #tpu.memory_space<vmem>>, vector<1x8x4xf32>,
    %c4_i32 = arith.constant 4 : i32
    %cst_30 = arith.constant dense<0.000000e+00> : vector<8x32xf32>
    %58 = tpu.matmul %53, %0, %cst_30 {dimension_numbers = #tpu.dot_dimension_numbers<[1], [0], [0], [1], [0, 0, 1, 1], [], []>} : vector<8x4xf32>, vector<4x32xf32>, vector<8x32xf32> -> vector<8x32xf32>
    %59 = arith.index_cast %c4_i32 : i32 to index
    %c0_31 = arith.constant 0 : index
    %c0_32 = arith.constant 0 : index
    %60 = vector.load %arg2[%59, %c0_31, %c0_32] : memref<8x8x32xf32, #tpu.memory_space<vmem>>, vector<1x8x32xf32>
    %61 = vector.shape_cast %60 : vector<1x8x32xf32> to vector<8x32xf32>
    %62 = arith.addf %58, %61 : vector<8x32xf32>
    %63 = math.tanh %62 : vector<8x32xf32>
    %cst_33 = arith.constant dense<0.000000e+00> : vector<8x4xf32>
    %64 = tpu.matmul %63, %1, %cst_33 {dimension_numbers = #tpu.dot_dimension_numbers<[1], [0], [0], [1], [0, 0, 1, 1], [], []>} : vector<8x32xf32>, vector<32x4xf32>, vector<8x4xf32> -> vector<8x4xf32>
    %65 = arith.addf %53, %64 : vector<8x4xf32>
    %66 = arith.addf %65, %4 : vector<8x4xf32>
    %67 = arith.index_cast %c4_i32 : i32 to index
    %c0_34 = arith.constant 0 : index
    %c0_35 = arith.constant 0 : index
    %68 = vector.load %arg6[%67, %c0_34, %c0_35] : memref<8x8x4xf32, #tpu.memory_space<vmem>>, vector<1x8x4xf32>
    %69 = vector.shape_cast %68 : vector<1x8x4xf32> to vector<8x4xf32>
    %70 = vector.shape_cast %66 : vector<8x4xf32> to vector<1x8x4xf32>
    tpu.vector_store %arg6[%67, %c0_34, %c0_35], %70 {strides = array<i32>} : memref<8x8x4xf32, #tpu.memory_space<vmem>>, vector<1x8x4xf32>,
    %c5_i32 = arith.constant 5 : i32
    %cst_36 = arith.constant dense<0.000000e+00> : vector<8x32xf32>
    %71 = tpu.matmul %66, %0, %cst_36 {dimension_numbers = #tpu.dot_dimension_numbers<[1], [0], [0], [1], [0, 0, 1, 1], [], []>} : vector<8x4xf32>, vector<4x32xf32>, vector<8x32xf32> -> vector<8x32xf32>
    %72 = arith.index_cast %c5_i32 : i32 to index
    %c0_37 = arith.constant 0 : index
    %c0_38 = arith.constant 0 : index
    %73 = vector.load %arg2[%72, %c0_37, %c0_38] : memref<8x8x32xf32, #tpu.memory_space<vmem>>, vector<1x8x32xf32>
    %74 = vector.shape_cast %73 : vector<1x8x32xf32> to vector<8x32xf32>
    %75 = arith.addf %71, %74 : vector<8x32xf32>
    %76 = math.tanh %75 : vector<8x32xf32>
    %cst_39 = arith.constant dense<0.000000e+00> : vector<8x4xf32>
    %77 = tpu.matmul %76, %1, %cst_39 {dimension_numbers = #tpu.dot_dimension_numbers<[1], [0], [0], [1], [0, 0, 1, 1], [], []>} : vector<8x32xf32>, vector<32x4xf32>, vector<8x4xf32> -> vector<8x4xf32>
    %78 = arith.addf %66, %77 : vector<8x4xf32>
    %79 = arith.addf %78, %4 : vector<8x4xf32>
    %80 = arith.index_cast %c5_i32 : i32 to index
    %c0_40 = arith.constant 0 : index
    %c0_41 = arith.constant 0 : index
    %81 = vector.load %arg6[%80, %c0_40, %c0_41] : memref<8x8x4xf32, #tpu.memory_space<vmem>>, vector<1x8x4xf32>
    %82 = vector.shape_cast %81 : vector<1x8x4xf32> to vector<8x4xf32>
    %83 = vector.shape_cast %79 : vector<8x4xf32> to vector<1x8x4xf32>
    tpu.vector_store %arg6[%80, %c0_40, %c0_41], %83 {strides = array<i32>} : memref<8x8x4xf32, #tpu.memory_space<vmem>>, vector<1x8x4xf32>,
    %c6_i32 = arith.constant 6 : i32
    %cst_42 = arith.constant dense<0.000000e+00> : vector<8x32xf32>
    %84 = tpu.matmul %79, %0, %cst_42 {dimension_numbers = #tpu.dot_dimension_numbers<[1], [0], [0], [1], [0, 0, 1, 1], [], []>} : vector<8x4xf32>, vector<4x32xf32>, vector<8x32xf32> -> vector<8x32xf32>
    %85 = arith.index_cast %c6_i32 : i32 to index
    %c0_43 = arith.constant 0 : index
    %c0_44 = arith.constant 0 : index
    %86 = vector.load %arg2[%85, %c0_43, %c0_44] : memref<8x8x32xf32, #tpu.memory_space<vmem>>, vector<1x8x32xf32>
    %87 = vector.shape_cast %86 : vector<1x8x32xf32> to vector<8x32xf32>
    %88 = arith.addf %84, %87 : vector<8x32xf32>
    %89 = math.tanh %88 : vector<8x32xf32>
    %cst_45 = arith.constant dense<0.000000e+00> : vector<8x4xf32>
    %90 = tpu.matmul %89, %1, %cst_45 {dimension_numbers = #tpu.dot_dimension_numbers<[1], [0], [0], [1], [0, 0, 1, 1], [], []>} : vector<8x32xf32>, vector<32x4xf32>, vector<8x4xf32> -> vector<8x4xf32>
    %91 = arith.addf %79, %90 : vector<8x4xf32>
    %92 = arith.addf %91, %4 : vector<8x4xf32>
    %93 = arith.index_cast %c6_i32 : i32 to index
    %c0_46 = arith.constant 0 : index
    %c0_47 = arith.constant 0 : index
    %94 = vector.load %arg6[%93, %c0_46, %c0_47] : memref<8x8x4xf32, #tpu.memory_space<vmem>>, vector<1x8x4xf32>
    %95 = vector.shape_cast %94 : vector<1x8x4xf32> to vector<8x4xf32>
    %96 = vector.shape_cast %92 : vector<8x4xf32> to vector<1x8x4xf32>
    tpu.vector_store %arg6[%93, %c0_46, %c0_47], %96 {strides = array<i32>} : memref<8x8x4xf32, #tpu.memory_space<vmem>>, vector<1x8x4xf32>,
    %c7_i32 = arith.constant 7 : i32
    %cst_48 = arith.constant dense<0.000000e+00> : vector<8x32xf32>
    %97 = tpu.matmul %92, %0, %cst_48 {dimension_numbers = #tpu.dot_dimension_numbers<[1], [0], [0], [1], [0, 0, 1, 1], [], []>} : vector<8x4xf32>, vector<4x32xf32>, vector<8x32xf32> -> vector<8x32xf32>
    %98 = arith.index_cast %c7_i32 : i32 to index
    %c0_49 = arith.constant 0 : index
    %c0_50 = arith.constant 0 : index
    %99 = vector.load %arg2[%98, %c0_49, %c0_50] : memref<8x8x32xf32, #tpu.memory_space<vmem>>, vector<1x8x32xf32>
    %100 = vector.shape_cast %99 : vector<1x8x32xf32> to vector<8x32xf32>
    %101 = arith.addf %97, %100 : vector<8x32xf32>
    %102 = math.tanh %101 : vector<8x32xf32>
    %cst_51 = arith.constant dense<0.000000e+00> : vector<8x4xf32>
    %103 = tpu.matmul %102, %1, %cst_51 {dimension_numbers = #tpu.dot_dimension_numbers<[1], [0], [0], [1], [0, 0, 1, 1], [], []>} : vector<8x32xf32>, vector<32x4xf32>, vector<8x4xf32> -> vector<8x4xf32>
    %104 = arith.addf %92, %103 : vector<8x4xf32>
    %105 = arith.addf %104, %4 : vector<8x4xf32>
    %106 = arith.index_cast %c7_i32 : i32 to index
    %c0_52 = arith.constant 0 : index
    %c0_53 = arith.constant 0 : index
    %107 = vector.load %arg6[%106, %c0_52, %c0_53] : memref<8x8x4xf32, #tpu.memory_space<vmem>>, vector<1x8x4xf32>
    %108 = vector.shape_cast %107 : vector<1x8x4xf32> to vector<8x4xf32>
    %109 = vector.shape_cast %105 : vector<8x4xf32> to vector<1x8x4xf32>
    tpu.vector_store %arg6[%106, %c0_52, %c0_53], %109 {strides = array<i32>} : memref<8x8x4xf32, #tpu.memory_space<vmem>>, vector<1x8x4xf32>,
    %c8_i32 = arith.constant 8 : i32
    return
  }
  func.func @transform_0(%arg0: i32) -> (i32, i32) {
    %c0_i32 = arith.constant 0 : i32
    %c0_i32_0 = arith.constant 0 : i32
    %c0_i32_1 = arith.constant 0 : i32
    return %c0_i32, %c0_i32_0 : i32, i32
  }
  func.func @transform_1(%arg0: i32) -> (i32, i32, i32) {
    %c0_i32 = arith.constant 0 : i32
    %c0_i32_0 = arith.constant 0 : i32
    %c0_i32_1 = arith.constant 0 : i32
    %c0_i32_2 = arith.constant 0 : i32
    return %c0_i32, %c0_i32_0, %c0_i32_1 : i32, i32, i32
  }
  func.func @transform_2(%arg0: i32) -> (i32, i32) {
    %c0_i32 = arith.constant 0 : i32
    %c0_i32_0 = arith.constant 0 : i32
    %c0_i32_1 = arith.constant 0 : i32
    return %c0_i32, %c0_i32_0 : i32, i32
  }
  func.func @transform_3(%arg0: i32) -> (i32, i32) {
    %c0_i32 = arith.constant 0 : i32
    %c0_i32_0 = arith.constant 0 : i32
    %c0_i32_1 = arith.constant 0 : i32
    return %c0_i32, %c0_i32_0 : i32, i32
  }
  func.func @transform_4(%arg0: i32) -> (i32, i32) {
    %c0_i32 = arith.constant 0 : i32
    %c0_i32_0 = arith.constant 0 : i32
    %c0_i32_1 = arith.constant 0 : i32
    return %c0_i32, %c0_i32_0 : i32, i32
  }
  func.func @transform_5(%arg0: i32) -> (i32, i32, i32) {
    %c0_i32 = arith.constant 0 : i32
    %c0_i32_0 = arith.constant 0 : i32
    %c0_i32_1 = arith.constant 0 : i32
    %c0_i32_2 = arith.constant 0 : i32
    return %c0_i32, %c0_i32_0, %c0_i32_1 : i32, i32, i32
  }
}

</mosaic_0001>

<bundles_post_ra>
// kernel: tpu_custom_call.1
= control target key start
LH: loop header
LB: loop body
LE: loop exit
PB: predicated region body
PF: predicated region fallthrough
CT: control target
= control target key end

     0   :  { %10 = vsyncpa [#allocation3], 0  ;;  %s556_s21 = smov [#allocation2]   ;;  %s557_s23 = smov 128   ;;  %s729_s0 = inlined_call_operand.vmem [shape: f32[8,4], index: 0, kind: input, shape index: {}]   ;;  %s730_s1 = inlined_call_operand.hbm [shape: f32[8,8,32], index: 1, kind: input, shape index: {}]   ;;  %s731_s2 = inlined_call_operand.vmem [shape: f32[4,32], index: 2, kind: input, shape index: {}]   ;;  %s732_s3 = inlined_call_operand.vmem [shape: f32[32,4], index: 3, kind: input, shape index: {}]   ;;  %s733_s4 = inlined_call_operand.vmem [shape: f32[1,4], index: 4, kind: input, shape index: {}]   ;;  %s734_s5 = inlined_call_operand.vmem [shape: f32[8,8,4], index: 5, kind: output, shape index: {}]  }
   0x1   :  { %s17_s20 = sshll.u32 %s730_s1, 4  ;;  %s19_s22 = sshll.u32 %s556_s21, 4  ;;  %s18_s20 = int_to_ptr.hbm [resolvable:$true] %s17_s20  ;;  %s20_s22 = int_to_ptr.vmem [resolvable:$true] %s19_s22 }
   0x2   :  { %s558_s24 = smov 8  }
   0x3   :  { %25 = dma.hbm_to_vmem [thread:$0]  %s18_s20, 1024, %s20_s22, [#allocation3], %s557_s23, %s557_s23, %s558_s24  }
   0x4   :  { %554 = dma.done.wait [#allocation3], 1024  }
   0x5   :  { %555 = vsyncadd [#allocation3], 4294966272  ;;  %vm51_vm0 = vcmask 1043456   ;;  %vm47_vm1 = vcmask 31744   ;;  %v595_v0 = vld [vmem:[%s731_s2] sm:$0xf] }
   0x6   :  { %v45_v1 = vld [vmem:[%s729_s0] sm:$0xff]  ;;  %479 = vmatpush.msk.msra.mxu0 %vm51_vm0, %v595_v0  ;;  %482 = vmatpush.msk.msra.mxu2 %vm51_vm0, %v595_v0  ;;  %v612_v2 = vld [vmem:[%s732_s3 + $0x18] sm:$0xff]  ;;  %v618_v3 = vld [vmem:[%s732_s3 + $0x10] sm:$0xff]  ;;  %vm76_vm2 = vcmask 261120  }
   0x7   :  { %480 = vmatmul.msk.f32.vlgmr.msra.gmra.mxu0 %vm47_vm1, %v45_v1  ;;  %92 = vmatpush.msra.mxu1 %v612_v2  ;;  %v624_v4 = vld [vmem:[%s732_s3 + $0x8] sm:$0xff]  ;;  %v632_v5 = vld [vmem:[%s732_s3] sm:$0xff]  ;;  %v157_v21 = vld [vmem:[#allocation2 + $0x10] sm:$0xff] }
   0x8   :  { %486 = vmatpush.msk.msrb.mxu0 %vm51_vm0, %v595_v0  ;;  %144 = vmatpush.msra.mxu3 %v612_v2  ;;  %v46_v6 = vld [vmem:[#allocation2] sm:$0xff]  ;;  %v104_v14 = vld [vmem:[#allocation2 + $0x8] sm:$0xff]  ;;  %v210_v28 = vld [vmem:[#allocation2 + $0x18] sm:$0xff] }
   0x9   :  { %197 = vmatpush.msrb.mxu2 %v612_v2  ;;  %93 = vmatpush.msra.mxu1 %v618_v3  ;;  %v653_v10 = vld [vmem:[%s733_s4] ss:$0 sm:$0xff]  ;;  %v316_v42 = vld [vmem:[#allocation2 + $0x28] sm:$0xff]  ;;  %v369_v49 = vld [vmem:[#allocation2 + $0x30] sm:$0xff] }
   0xa   :  { %494 = vmatpush.msk.msra.mxu0 %vm51_vm0, %v595_v0  ;;  %145 = vmatpush.msra.mxu3 %v618_v3  ;;  %v263_v35 = vld [vmem:[#allocation2 + $0x20] sm:$0xff]  ;;  %v422_v56 = vld [vmem:[#allocation2 + $0x38] sm:$0xff] }
   0xb   :  { %198 = vmatpush.msrb.mxu2 %v618_v3  ;;  %94 = vmatpush.msra.mxu1 %v624_v4 }
   0xc   :  { %146 = vmatpush.msra.mxu3 %v624_v4 }
   0xd   :  { %199 = vmatpush.msrb.mxu2 %v624_v4  ;;  %95 = vmatpush.msra.mxu1 %v632_v5 }
   0xe   :  { %147 = vmatpush.msra.mxu3 %v632_v5 }
   0xf   :  { %200 = vmatpush.msrb.mxu2 %v632_v5  ;;  %490 = vmatpush.msk.msrb.mxu1 %vm51_vm0, %v595_v0 }
  0x10   :  { %250 = vmatpush.msrb.mxu3 %v612_v2 }
  0x12   :  { %251 = vmatpush.msrb.mxu3 %v618_v3 }
  0x14   :  { %252 = vmatpush.msrb.mxu3 %v624_v4 }
  0x16   :  { %253 = vmatpush.msrb.mxu3 %v632_v5 }
  0x84   :  { %v72_v7 = vpop.f32.mrf.mxu0 }
  0x85   :  { %v73_v8 = vadd.f32 %v72_v7, %v46_v6 }
  0x87   :  { %514 = vtanh.f32 %v73_v8 }
  0x8d   :  { %v515_v9 = vpop.eup %514 }
  0x8e   :  { %481 = vmatmul.msk.f32.vlgmr.msra.gmra.mxu1 %vm76_vm2, %v515_v9 }
  0x8f   :  { %498 = vmatpush.msk.msra.mxu1 %vm51_vm0, %v595_v0 }
 0x10b   :  { %v97_v11 = vpop.f32.mrf.mxu1 }
 0x10c   :  { %v100_v12 = vadd.f32 %v97_v11, %v45_v1 }
 0x10e   :  { %v101_v13 = vadd.f32 %v653_v10, %v100_v12 }
 0x110   :  { %102 = vst.msk [vmem:[%s734_s5] sm:$0xff] %vm47_vm1, %v101_v13  ;;  %483 = vmatmul.msk.f32.vlgmr.msra.gmra.mxu2 %vm47_vm1, %v101_v13 }
 0x111   :  { %303 = vmatpush.msra.mxu2 %v612_v2 }
 0x113   :  { %304 = vmatpush.msra.mxu2 %v618_v3 }
 0x115   :  { %305 = vmatpush.msra.mxu2 %v624_v4 }
 0x117   :  { %306 = vmatpush.msra.mxu2 %v632_v5 }
 0x193   :  { %v125_v15 = vpop.f32.mrf.mxu2 }
 0x194   :  { %v126_v16 = vadd.f32 %v125_v15, %v104_v14 }
 0x196   :  { %516 = vtanh.f32 %v126_v16 }
 0x19c   :  { %v517_v17 = vpop.eup %516 }
 0x19d   :  { %484 = vmatmul.msk.f32.vlgmr.msra.gmra.mxu3 %vm76_vm2, %v517_v17 }
 0x19e   :  { %356 = vmatpush.msra.mxu3 %v612_v2 }
 0x1a0   :  { %357 = vmatpush.msra.mxu3 %v618_v3 }
 0x1a2   :  { %358 = vmatpush.msra.mxu3 %v624_v4 }
 0x1a4   :  { %359 = vmatpush.msra.mxu3 %v632_v5 }
 0x220   :  { %v149_v18 = vpop.f32.mrf.mxu3 }
 0x221   :  { %v152_v19 = vadd.f32 %v149_v18, %v101_v13 }
 0x223   :  { %v153_v20 = vadd.f32 %v653_v10, %v152_v19 }
 0x225   :  { %485 = vst.msk [vmem:[%s734_s5 + $0x8] sm:$0xff] %vm47_vm1, %v153_v20  ;;  %487 = vmatmul.msk.f32.vlgmr.msrb.gmra.mxu0 %vm47_vm1, %v153_v20 }
 0x226   :  { %502 = vmatpush.msk.msrb.mxu0 %vm51_vm0, %v595_v0 }
 0x2a2   :  { %v178_v22 = vpop.f32.mrf.mxu0 }
 0x2a3   :  { %v179_v23 = vadd.f32 %v178_v22, %v157_v21 }
 0x2a5   :  { %518 = vtanh.f32 %v179_v23 }
 0x2ab   :  { %v519_v24 = vpop.eup %518 }
 0x2ac   :  { %488 = vmatmul.msk.f32.vlgmr.msrb.gmra.mxu2 %vm76_vm2, %v519_v24 }
 0x2ad   :  { %409 = vmatpush.msrb.mxu2 %v612_v2 }
 0x2af   :  { %410 = vmatpush.msrb.mxu2 %v618_v3 }
 0x2b1   :  { %411 = vmatpush.msrb.mxu2 %v624_v4 }
 0x2b3   :  { %412 = vmatpush.msrb.mxu2 %v632_v5 }
 0x32f   :  { %v202_v25 = vpop.f32.mrf.mxu2 }
 0x330   :  { %v205_v26 = vadd.f32 %v202_v25, %v153_v20 }
 0x332   :  { %v206_v27 = vadd.f32 %v653_v10, %v205_v26 }
 0x334   :  { %489 = vst.msk [vmem:[%s734_s5 + $0x10] sm:$0xff] %vm47_vm1, %v206_v27  ;;  %491 = vmatmul.msk.f32.vlgmr.msrb.gmra.mxu1 %vm47_vm1, %v206_v27 }
 0x335   :  { %506 = vmatpush.msk.msrb.mxu1 %vm51_vm0, %v595_v0 }
 0x3b1   :  { %v231_v29 = vpop.f32.mrf.mxu1 }
 0x3b2   :  { %v232_v30 = vadd.f32 %v231_v29, %v210_v28 }
 0x3b4   :  { %520 = vtanh.f32 %v232_v30 }
 0x3ba   :  { %v521_v31 = vpop.eup %520 }
 0x3bb   :  { %492 = vmatmul.msk.f32.vlgmr.msrb.gmra.mxu3 %vm76_vm2, %v521_v31 }
 0x3bc   :  { %462 = vmatpush.msrb.mxu3 %v612_v2 }
 0x3be   :  { %463 = vmatpush.msrb.mxu3 %v618_v3 }
 0x3c0   :  { %464 = vmatpush.msrb.mxu3 %v624_v4 }
 0x3c2   :  { %465 = vmatpush.msrb.mxu3 %v632_v5 }
 0x43e   :  { %v255_v32 = vpop.f32.mrf.mxu3 }
 0x43f   :  { %v258_v33 = vadd.f32 %v255_v32, %v206_v27 }
 0x441   :  { %v259_v34 = vadd.f32 %v653_v10, %v258_v33 }
 0x443   :  { %493 = vst.msk [vmem:[%s734_s5 + $0x18] sm:$0xff] %vm47_vm1, %v259_v34  ;;  %495 = vmatmul.msk.f32.vlgmr.msra.gmra.mxu0 %vm47_vm1, %v259_v34 }
 0x4c0   :  { %v284_v36 = vpop.f32.mrf.mxu0 }
 0x4c1   :  { %v285_v37 = vadd.f32 %v284_v36, %v263_v35 }
 0x4c3   :  { %522 = vtanh.f32 %v285_v37 }
 0x4c9   :  { %v523_v38 = vpop.eup %522 }
 0x4ca   :  { %496 = vmatmul.msk.f32.vlgmr.msra.gmra.mxu2 %vm76_vm2, %v523_v38 }
 0x54d   :  { %v308_v39 = vpop.f32.mrf.mxu2 }
 0x54e   :  { %v311_v40 = vadd.f32 %v308_v39, %v259_v34 }
 0x550   :  { %v312_v41 = vadd.f32 %v653_v10, %v311_v40 }
 0x552   :  { %497 = vst.msk [vmem:[%s734_s5 + $0x20] sm:$0xff] %vm47_vm1, %v312_v41  ;;  %499 = vmatmul.msk.f32.vlgmr.msra.gmra.mxu1 %vm47_vm1, %v312_v41 }
 0x5cf   :  { %v337_v43 = vpop.f32.mrf.mxu1 }
 0x5d0   :  { %v338_v44 = vadd.f32 %v337_v43, %v316_v42 }
 0x5d2   :  { %524 = vtanh.f32 %v338_v44 }
 0x5d8   :  { %v525_v45 = vpop.eup %524 }
 0x5d9   :  { %500 = vmatmul.msk.f32.vlgmr.msra.gmra.mxu3 %vm76_vm2, %v525_v45 }
 0x65c   :  { %v361_v46 = vpop.f32.mrf.mxu3 }
 0x65d   :  { %v364_v47 = vadd.f32 %v361_v46, %v312_v41 }
 0x65f   :  { %v365_v48 = vadd.f32 %v653_v10, %v364_v47 }
 0x661   :  { %501 = vst.msk [vmem:[%s734_s5 + $0x28] sm:$0xff] %vm47_vm1, %v365_v48  ;;  %503 = vmatmul.msk.f32.vlgmr.msrb.gmra.mxu0 %vm47_vm1, %v365_v48 }
 0x6de   :  { %v390_v50 = vpop.f32.mrf.mxu0 }
 0x6df   :  { %v391_v51 = vadd.f32 %v390_v50, %v369_v49 }
 0x6e1   :  { %526 = vtanh.f32 %v391_v51 }
 0x6e7   :  { %v527_v52 = vpop.eup %526 }
 0x6e8   :  { %504 = vmatmul.msk.f32.vlgmr.msrb.gmra.mxu2 %vm76_vm2, %v527_v52 }
 0x76b   :  { %v414_v53 = vpop.f32.mrf.mxu2 }
 0x76c   :  { %v417_v54 = vadd.f32 %v414_v53, %v365_v48 }
 0x76e   :  { %v418_v55 = vadd.f32 %v653_v10, %v417_v54 }
 0x770   :  { %505 = vst.msk [vmem:[%s734_s5 + $0x30] sm:$0xff] %vm47_vm1, %v418_v55  ;;  %507 = vmatmul.msk.f32.vlgmr.msrb.gmra.mxu1 %vm47_vm1, %v418_v55 }
 0x7ed   :  { %v443_v57 = vpop.f32.mrf.mxu1 }
 0x7ee   :  { %v444_v58 = vadd.f32 %v443_v57, %v422_v56 }
 0x7f0   :  { %528 = vtanh.f32 %v444_v58 }
 0x7f6   :  { %v529_v59 = vpop.eup %528 }
 0x7f7   :  { %508 = vmatmul.msk.f32.vlgmr.msrb.gmra.mxu3 %vm76_vm2, %v529_v59 }
 0x87a   :  { %v467_v60 = vpop.f32.mrf.mxu3 }
 0x87b   :  { %v470_v61 = vadd.f32 %v467_v60, %v418_v55 }
 0x87d   :  { %v471_v62 = vadd.f32 %v653_v10, %v470_v61 }
 0x87f   :  { %509 = vst.msk [vmem:[%s734_s5 + $0x38] sm:$0xff] %vm47_vm1, %v471_v62 }
 0x880   :  { %478 = vsyncpa [#allocation3], 1 }

</bundles_post_ra>
